<compile_context>
chip_gen: v7x
topology: tpu7x:2x2x1
jax: 0.10.0
libtpu: 0.0.40
codegen_flags: <defaults>
</compile_context>

<pallas_src>
import functools

import jax
import jax.numpy as jnp
from jax.experimental import pallas as pl
from jax.experimental.pallas import tpu as pltpu


def _round_up(a, b):
    return -(-a // b) * b


def _vmem_budget():
    """(scoped vmem limit, per-tile byte budget) — TPU-generation aware."""
    try:
        cap = int(pltpu.get_tpu_info().vmem_capacity_bytes)
    except Exception:  # not queryable: assume the smallest (v7x, 64 MiB per TC)
        cap = 64 * 1024 * 1024
    if cap >= 100 * 1024 * 1024:                    # v5e / v6e: 128 MiB physical VMEM
        return 64 * 1024 * 1024, 6 * 1024 * 1024
    return 40 * 1024 * 1024, 4 * 1024 * 1024        # v7x: 64 MiB physical VMEM


# ---------------------------------------------------------------------------
# Fused single-pass kernel for slabs that fit VMEM: one HBM read + one write.
# Operates directly on the (N, E) slab (no packing / padding / masking).
#   bn(x) = gamma * (x - mean) * rsqrt(var + eps) + beta
#   out   = x * (alpha + sigmoid(bn) * (1 - alpha))
# ---------------------------------------------------------------------------
def _dice_fused_kernel(x_ref, p_ref, o_ref, *, n_rows, eps):
    xf = x_ref[...].astype(jnp.float32)                     # (N, E)
    p = p_ref[...]                                          # (8, E): gamma/beta/alpha
    gamma, beta, alpha = p[0:1, :], p[1:2, :], p[2:3, :]
    inv_n = 1.0 / float(n_rows)
    mean = jnp.sum(xf, axis=0, keepdims=True) * inv_n
    cen = xf - mean
    var = jnp.sum(cen * cen, axis=0, keepdims=True) * inv_n  # biased (BN training)
    scale = gamma * jax.lax.rsqrt(var + eps)
    shift = beta - mean * scale
    x_p = jax.nn.sigmoid(xf * scale + shift)
    o_ref[...] = (xf * (alpha + x_p * (1.0 - alpha))).astype(o_ref.dtype)


# ---------------------------------------------------------------------------
# Pass 1: per-packed-column batch statistics (count, mean, M2) via Chan merge.
# x_ref: (TN, W) tile.  cnt/mean/m2 refs: (1, W) resident accumulators (same
# output block for every grid step -> stays in VMEM, written back once).
# Only the last tile pays for masking.
# ---------------------------------------------------------------------------
def _dice_stats_kernel(x_ref, cnt_ref, mean_ref, m2_ref, *,
                       tn, pack, emb, n_valid, needs_mask):
    i = pl.program_id(0)
    xf = x_ref[...].astype(jnp.float32)                      # (TN, W)
    w = xf.shape[1]

    def merge(cnt_t, mean_t, m2_t):
        @pl.when(i == 0)
        def _():
            cnt_ref[...] = cnt_t
            mean_ref[...] = mean_t
            m2_ref[...] = m2_t

        @pl.when(i > 0)
        def _():
            n_a = cnt_ref[...]
            n_b = cnt_t
            n_ab = n_a + n_b
            inv = 1.0 / jnp.maximum(n_ab, 1.0)
            delta = mean_t - mean_ref[...]
            mean_ref[...] = mean_ref[...] + delta * (n_b * inv)
            m2_ref[...] = m2_ref[...] + m2_t + (delta * delta) * (n_a * n_b * inv)
            cnt_ref[...] = n_ab

    def clean_stats():
        cnt_t = jnp.full((1, w), float(tn), jnp.float32)
        mean_t = jnp.mean(xf, axis=0, keepdims=True)
        cen = xf - mean_t
        m2_t = jnp.sum(cen * cen, axis=0, keepdims=True)
        merge(cnt_t, mean_t, m2_t)

    def masked_stats():
        # Packed element (r, g*emb + e) holds original row r*pack + g; the valid
        # rows of every column form a prefix:  row < thr(col).
        if pack > 1:
            g = jax.lax.broadcasted_iota(jnp.int32, (1, w), 1) // emb
            thr = (n_valid - g + (pack - 1)) // pack          # pack is a power of two
        else:
            thr = jnp.full((1, w), n_valid, jnp.int32)
        thr_loc = jnp.clip(thr - i * tn, 0, tn)               # valid rows in this tile
        row = jax.lax.broadcasted_iota(jnp.int32, xf.shape, 0)
        valid = row < thr_loc
        cnt_t = thr_loc.astype(jnp.float32)
        sum_t = jnp.sum(jnp.where(valid, xf, 0.0), axis=0, keepdims=True)
        mean_t = sum_t / jnp.maximum(cnt_t, 1.0)
        cen = jnp.where(valid, xf - mean_t, 0.0)
        m2_t = jnp.sum(cen * cen, axis=0, keepdims=True)
        merge(cnt_t, mean_t, m2_t)

    if not needs_mask:
        clean_stats()
    else:
        last = pl.num_programs(0) - 1

        @pl.when(i < last)
        def _():
            clean_stats()

        @pl.when(i == last)
        def _():
            masked_stats()


# ---------------------------------------------------------------------------
# Pass 2: elementwise normalize + sigmoid + Dice gate.  Fully parallel tiles.
#   bn(x) = x * scale + shift        (BN affine folded into scale/shift)
#   out   = x * (alpha + sigmoid(bn) * (1 - alpha))
# scale/shift/alpha are packed into one (8, W) operand (rows 0..2).
# ---------------------------------------------------------------------------
def _dice_norm_kernel(x_ref, p_ref, o_ref):
    xf = x_ref[...].astype(jnp.float32)                      # (TN, W)
    p = p_ref[...]                                           # (8, W)
    scale, shift, alpha = p[0:1, :], p[1:2, :], p[2:3, :]
    x_p = jax.nn.sigmoid(xf * scale + shift)
    o_ref[...] = (xf * (alpha + x_p * (1.0 - alpha))).astype(o_ref.dtype)


def dice_forward(x, alpha, gamma, beta, *, dim=2, eps=1e-8,
                 force_two_pass=False, max_tile_rows=None):
    """Dice forward (training-mode BatchNorm1d statistics)."""
    assert x.ndim == dim and dim in (2, 3)
    orig_shape = x.shape
    E = orig_shape[-1]
    N = 1
    for s in orig_shape[:-1]:
        N *= s
    x2 = x.reshape(N, E)

    itemsize = jnp.dtype(x.dtype).itemsize
    granule = max(8, 32 // itemsize)          # sublane granule (f32:8, bf16:16, i8:32)
    vmem_limit, tile_budget = _vmem_budget()

    gamma_f = jnp.asarray(gamma, jnp.float32).reshape(E)
    beta_f = jnp.asarray(beta, jnp.float32).reshape(E)
    alpha_f = jnp.asarray(alpha, jnp.float32).reshape(E)

    # ---- Fused single-pass path (small / medium slabs) ----------------------
    lane_w = _round_up(E, 128)                # VMEM lane-padded width
    fused_bytes = _round_up(max(N, 1), 8) * lane_w * 4
    if (not force_two_pass) and fused_bytes <= vmem_limit // 8:
        params = jnp.zeros((8, E), jnp.float32)
        params = params.at[0].set(gamma_f).at[1].set(beta_f).at[2].set(alpha_f)
        out2 = pl.pallas_call(
            functools.partial(_dice_fused_kernel, n_rows=N, eps=float(eps)),
            out_shape=jax.ShapeDtypeStruct((N, E), x.dtype),
            compiler_params=pltpu.CompilerParams(vmem_limit_bytes=vmem_limit),
        )(x2, params)
        return out2.reshape(orig_shape)

    # ---- Two-pass streaming path --------------------------------------------
    # Lane-dense packing: P consecutive rows side-by-side -> last dim W.
    col_pad = 0
    if E % 128 == 0:
        P, Ew = 1, E
    elif 128 % E == 0:
        P, Ew = 512 // E, E                   # W = 512: wide, unmasked vector stores
    else:
        Ew = _round_up(E, 128)                # pad features to a lane-dense width
        col_pad = Ew - E
        P = 1
    W = P * Ew

    NP = -(-N // P)                           # packed rows
    row_bytes = W * itemsize
    tn_cap = max(granule, (tile_budget // row_bytes) // granule * granule)
    if max_tile_rows is not None:
        tn_cap = max(granule, min(tn_cap, _round_up(int(max_tile_rows), granule)))
    TN = max(granule, min(tn_cap, _round_up(NP, granule)))
    NP_pad = _round_up(NP, TN)
    num_tiles = NP_pad // TN

    row_pad = NP_pad * P - N
    if row_pad or col_pad:                    # single pad (one HBM round trip)
        x2 = jnp.pad(x2, ((0, row_pad), (0, col_pad)))
    xp = x2.reshape(NP_pad, W)
    needs_mask = row_pad > 0

    if col_pad:
        gamma_f = jnp.pad(gamma_f, (0, col_pad), constant_values=1.0)
        beta_f = jnp.pad(beta_f, (0, col_pad))
        alpha_f = jnp.pad(alpha_f, (0, col_pad))

    # ---- Pass 1: per-packed-column batch statistics -------------------------
    cnt_p, mean_p, m2_p = pl.pallas_call(
        functools.partial(_dice_stats_kernel, tn=TN, pack=P, emb=Ew,
                          n_valid=N, needs_mask=needs_mask),
        out_shape=(jax.ShapeDtypeStruct((1, W), jnp.float32),) * 3,
        grid=(num_tiles,),
        in_specs=[pl.BlockSpec((TN, W), lambda i: (i, 0))],
        out_specs=(pl.BlockSpec((1, W), lambda i: (0, 0)),) * 3,
        compiler_params=pltpu.CompilerParams(
            dimension_semantics=("arbitrary",),
            vmem_limit_bytes=vmem_limit),
    )(xp)

    # Fold the P lane groups into per-feature stats (tiny (P, Ew) arrays; plain JAX).
    cnt_g = cnt_p.reshape(P, Ew)
    mean_g = mean_p.reshape(P, Ew)
    m2_g = m2_p.reshape(P, Ew)
    n_tot = jnp.sum(cnt_g, axis=0)                             # == N per feature
    mean = jnp.sum(cnt_g * mean_g, axis=0) / n_tot
    m2 = jnp.sum(m2_g + cnt_g * (mean_g - mean) ** 2, axis=0)
    var = m2 / n_tot                                           # biased (BN training)
    scale = gamma_f * jax.lax.rsqrt(var + eps)
    shift = beta_f - mean * scale

    params2 = jnp.zeros((8, W), jnp.float32)
    params2 = (params2.at[0].set(jnp.tile(scale, P))
                       .at[1].set(jnp.tile(shift, P))
                       .at[2].set(jnp.tile(alpha_f, P)))

    # ---- Pass 2: normalize + gate (fully parallel tiles) --------------------
    out_p = pl.pallas_call(
        _dice_norm_kernel,
        out_shape=jax.ShapeDtypeStruct((NP_pad, W), x.dtype),
        grid=(num_tiles,),
        in_specs=[pl.BlockSpec((TN, W), lambda i: (i, 0)),
                  pl.BlockSpec((8, W), lambda i: (0, 0))],
        out_specs=pl.BlockSpec((TN, W), lambda i: (i, 0)),
        compiler_params=pltpu.CompilerParams(
            dimension_semantics=("parallel",),
            vmem_limit_bytes=vmem_limit),
    )(xp, params2)

    out2 = out_p.reshape(NP_pad * P, Ew)
    if row_pad:
        out2 = out2[:N]
    if col_pad:
        out2 = out2[:, :E]
    return out2.reshape(orig_shape)


def dice_reference(x, alpha, gamma, beta, *, dim=2, eps=1e-8):
    """Pure-JAX reference mirroring the PyTorch forward (training-mode BN)."""
    E = x.shape[-1]
    xf = x.reshape(-1, E).astype(jnp.float32)
    mean = jnp.mean(xf, axis=0, keepdims=True)
    var = jnp.mean((xf - mean) ** 2, axis=0, keepdims=True)
    bn = (gamma.reshape(1, E) * (xf - mean) / jnp.sqrt(var + eps)
          + beta.reshape(1, E))
    x_p = jax.nn.sigmoid(bn)
    a = alpha.reshape(1, E)
    out = a * (1.0 - x_p) * xf + x_p * xf
    return out.astype(x.dtype).reshape(x.shape)


if __name__ == "__main__":
    key = jax.random.PRNGKey(0)
    k1, k2, k3, k4, k5, k6 = jax.random.split(key, 6)

    def check(x, alpha, gamma, beta, dim, **kw):
        out = jax.block_until_ready(dice_forward(x, alpha, gamma, beta, dim=dim, **kw))
        ref = dice_reference(x, alpha, gamma, beta, dim=dim)
        assert out.shape == x.shape and out.dtype == x.dtype
        assert jnp.allclose(out, ref, atol=1e-4, rtol=1e-4), \
            float(jnp.max(jnp.abs(out - ref)))

    E = 32
    gamma = jnp.ones((E,), jnp.float32)
    beta = jnp.zeros((E,), jnp.float32)

    # dim=2, tiny batch, fresh-init alpha (zeros) -> fused single-pass path.
    alpha0 = jnp.zeros((E,), jnp.float32)
    x2d = jax.random.normal(k1, (8, E), jnp.float32)
    check(x2d, alpha0, gamma, beta, 2)

    # dim=2, non-zero alpha, ragged N -> fused single-pass path.
    alpha1 = 0.3 * jax.random.normal(k2, (E,), jnp.float32)
    x2b = 2.0 * jax.random.normal(k3, (4999, E), jnp.float32) + 1.5
    check(x2b, alpha1, gamma, beta, 2)

    # Same input through the streaming two-pass path (wide W=512 packing,
    # masked last tile, multi-tile Chan merge).
    check(x2b, alpha1, gamma, beta, 2, force_two_pass=True, max_tile_rows=64)

    # dim=3, alpha of shape (E, 1) as in the PyTorch module.
    alpha3 = 0.2 * jax.random.normal(k4, (E, 1), jnp.float32)
    x3d = jax.random.normal(k5, (2, 8, E), jnp.float32)
    check(x3d, alpha3, gamma, beta, 3)

    # Embedding size that does not divide 128 (feature-padded lane-dense path).
    E2 = 48
    gamma2 = 1.1 * jnp.ones((E2,), jnp.float32)
    beta2 = 0.05 * jnp.ones((E2,), jnp.float32)
    alpha2 = 0.1 * jax.random.normal(k6, (E2,), jnp.float32)
    x48 = jax.random.normal(k1, (257, E2), jnp.float32)
    check(x48, alpha2, gamma2, beta2, 2)
    check(x48, alpha2, gamma2, beta2, 2, force_two_pass=True, max_tile_rows=32)

    print("KERNEL_OK")
</pallas_src>

<mosaic_0001>
module attributes {stable_mosaic.version = 11 : i64} {
  func.func @_dice_fused_kernel(%arg0: memref<8x32xf32, #tpu.memory_space<vmem>>, %arg1: memref<8x32xf32, #tpu.memory_space<vmem>>, %arg2: memref<8x32xf32, #tpu.memory_space<vmem>>) attributes {dimension_semantics = [], scalar_prefetch = 0 : i64, scratch_operands = 0 : i64, tpu.core_type = #tpu.core_type<tc>} {
    %c0 = arith.constant 0 : index
    %c0_0 = arith.constant 0 : index
    %0 = vector.load %arg0[%c0, %c0_0] : memref<8x32xf32, #tpu.memory_space<vmem>>, vector<8x32xf32>
    %c0_1 = arith.constant 0 : index
    %c0_2 = arith.constant 0 : index
    %1 = vector.load %arg1[%c0_1, %c0_2] : memref<8x32xf32, #tpu.memory_space<vmem>>, vector<8x32xf32>
    %2 = vector.extract_strided_slice %1 {offsets = [0, 0], sizes = [1, 32], strides = [1, 1]} : vector<8x32xf32> to vector<1x32xf32>
    %3 = vector.extract_strided_slice %1 {offsets = [1, 0], sizes = [1, 32], strides = [1, 1]} : vector<8x32xf32> to vector<1x32xf32>
    %4 = vector.extract_strided_slice %1 {offsets = [2, 0], sizes = [1, 32], strides = [1, 1]} : vector<8x32xf32> to vector<1x32xf32>
    %cst = arith.constant dense<0.000000e+00> : vector<32xf32>
    %5 = vector.multi_reduction <add>, %0, %cst [0] : vector<8x32xf32> to vector<32xf32>
    %6 = vector.shape_cast %5 : vector<32xf32> to vector<1x32xf32>
    %cst_3 = arith.constant 1.250000e-01 : f32
    %7 = vector.broadcast %cst_3 : f32 to vector<1x32xf32>
    %8 = arith.mulf %6, %7 : vector<1x32xf32>
    %9 = vector.broadcast %8 : vector<1x32xf32> to vector<8x32xf32>
    %10 = arith.subf %0, %9 : vector<8x32xf32>
    %11 = arith.mulf %10, %10 : vector<8x32xf32>
    %cst_4 = arith.constant dense<0.000000e+00> : vector<32xf32>
    %12 = vector.multi_reduction <add>, %11, %cst_4 [0] : vector<8x32xf32> to vector<32xf32>
    %13 = vector.shape_cast %12 : vector<32xf32> to vector<1x32xf32>
    %cst_5 = arith.constant 1.250000e-01 : f32
    %14 = vector.broadcast %cst_5 : f32 to vector<1x32xf32>
    %15 = arith.mulf %13, %14 : vector<1x32xf32>
    %cst_6 = arith.constant 9.99999993E-9 : f32
    %16 = vector.broadcast %cst_6 : f32 to vector<1x32xf32>
    %17 = arith.addf %15, %16 : vector<1x32xf32>
    %18 = math.rsqrt %17 : vector<1x32xf32>
    %19 = arith.mulf %2, %18 : vector<1x32xf32>
    %20 = arith.mulf %8, %19 : vector<1x32xf32>
    %21 = arith.subf %3, %20 : vector<1x32xf32>
    %22 = vector.broadcast %19 : vector<1x32xf32> to vector<8x32xf32>
    %23 = arith.mulf %0, %22 : vector<8x32xf32>
    %24 = vector.broadcast %21 : vector<1x32xf32> to vector<8x32xf32>
    %25 = arith.addf %23, %24 : vector<8x32xf32>
    %26 = arith.negf %25 : vector<8x32xf32>
    %27 = math.exp %26 : vector<8x32xf32>
    %cst_7 = arith.constant 1.000000e+00 : f32
    %28 = vector.broadcast %cst_7 : f32 to vector<8x32xf32>
    %29 = arith.addf %28, %27 : vector<8x32xf32>
    %30 = arith.divf %28, %29 : vector<8x32xf32>
    %cst_8 = arith.constant 1.000000e+00 : f32
    %31 = vector.broadcast %cst_8 : f32 to vector<1x32xf32>
    %32 = arith.subf %31, %4 : vector<1x32xf32>
    %33 = vector.broadcast %32 : vector<1x32xf32> to vector<8x32xf32>
    %34 = arith.mulf %30, %33 : vector<8x32xf32>
    %35 = vector.broadcast %4 : vector<1x32xf32> to vector<8x32xf32>
    %36 = arith.addf %35, %34 : vector<8x32xf32>
    %37 = arith.mulf %0, %36 : vector<8x32xf32>
    %c0_9 = arith.constant 0 : index
    %c0_10 = arith.constant 0 : index
    %38 = vector.load %arg2[%c0_9, %c0_10] : memref<8x32xf32, #tpu.memory_space<vmem>>, vector<8x32xf32>
    tpu.vector_store %arg2[%c0_9, %c0_10], %37 {strides = array<i32>} : memref<8x32xf32, #tpu.memory_space<vmem>>, vector<8x32xf32>,
    return
  }
}

</mosaic_0001>

<bundles_post_ra>
// kernel: tpu_custom_call.1
= control target key start
LH: loop header
LB: loop body
LE: loop exit
PB: predicated region body
PF: predicated region fallthrough
CT: control target
= control target key end

     0   :  { %7 = vsyncpa [#allocation3], 0  ;;  %s249_s0 = inlined_call_operand.hbm [shape: f32[8,32], index: 0, kind: input, shape index: {}]   ;;  %s250_s1 = inlined_call_operand.hbm [shape: f32[8,32], index: 1, kind: input, shape index: {}]   ;;  %s251_s2 = inlined_call_operand.hbm [shape: f32[8,32], index: 2, kind: output, shape index: {}]  }
   0x1   :  { %8 = vsyncpa [#allocation6], 0 }
   0x2   :  { %9 = vsyncpa [#allocation4], 0  ;;  %s192_s9 = smov [#allocation2]   ;;  %s193_s11 = smov [#allocation5]  }
   0x3   :  { %s16_s10 = sshll.u32 %s192_s9, 4  ;;  %s26_s12 = sshll.u32 %s193_s11, 4  ;;  %s17_s10 = int_to_ptr.vmem [resolvable:$true] %s16_s10  ;;  %s27_s12 = int_to_ptr.vmem [resolvable:$true] %s26_s12 }
   0x4   :  { %s120_s15 = scalar_lea.hbm %s249_s0, 128 }
   0x5   :  { %p121_p0 = scmp.ne.s32.totalorder %s249_s0, %s120_s15  ;;  %p124_p1 = scmp.lt.u32.totalorder %s120_s15, %s249_s0 }
   0x7   :  { %p126_p2 = pnand %p124_p1, %p121_p0 }
   0x9   :  { %129 = shalt.err (!%p126_p2)
}
   0xa   :  { %s130_s20 = scalar_lea.vmem %s17_s10, 128  ;;  %p135_p4 = scmp.lt.s32.totalorder %s17_s10, %s17_s10 }
   0xb   :  { %p131_p3 = scmp.ne.s32.totalorder %s17_s10, %s130_s20  ;;  %p136_p5 = scmp.lt.s32.totalorder %s130_s20, %s130_s20 }
   0xd   :  { %p137_p6 = por %p136_p5, %p135_p4 }
   0xf   :  { %p138_p7 = pnand %p137_p6, %p131_p3 }
  0x11   :  { %141 = shalt.err (!%p138_p7)
}
  0x12   :  { %19 = dma.hbm_to_vmem [thread:$0]  %s249_s0, 128, %s17_s10, [#allocation3]  }
  0x13   :  { %s142_s25 = scalar_lea.hbm %s250_s1, 128 }
  0x14   :  { %p143_p8 = scmp.ne.s32.totalorder %s250_s1, %s142_s25  ;;  %p146_p9 = scmp.lt.u32.totalorder %s142_s25, %s250_s1 }
  0x16   :  { %p148_p10 = pnand %p146_p9, %p143_p8 }
  0x18   :  { %151 = shalt.err (!%p148_p10)
}
  0x19   :  { %s152_s30 = scalar_lea.vmem %s27_s12, 128  ;;  %p157_p12 = scmp.lt.s32.totalorder %s27_s12, %s27_s12 }
  0x1a   :  { %p153_p11 = scmp.ne.s32.totalorder %s27_s12, %s152_s30  ;;  %p158_p13 = scmp.lt.s32.totalorder %s152_s30, %s152_s30 }
  0x1c   :  { %p159_p0 = por %p158_p13, %p157_p12 }
  0x1e   :  { %p160_p1 = pnand %p159_p0, %p153_p11 }
  0x20   :  { %163 = shalt.err (!%p160_p1)
}
  0x21   :  { %29 = dma.hbm_to_vmem [thread:$0]  %s250_s1, 128, %s27_s12, [#allocation6]  }
  0x22   :  { %186 = dma.done.wait [#allocation3], 128  }
  0x23   :  { %187 = vsyncadd [#allocation3], 4294967168 }
  0x24   :  { %188 = dma.done.wait [#allocation6], 128  }
  0x25   :  { %189 = vsyncadd [#allocation6], 4294967168  ;;  %vm38_vm0 = vcmask 261120   ;;  %v36_v0 = vld [vmem:[#allocation2] sm:$0xff]  ;;  %v65_v20 = vlaneseq  ;;  %v37_v22 = vld [vmem:[#allocation5] sm:$0xff]  ;;  %s194_s1 = smov [#allocation7]  }
  0x26   :  { %v39_v1 = vsel %vm38_vm0, %v36_v0, 0.0  ;;  %v81_v37 = vsub.f32 1.0, %v37_v22  ;;  %s100_s4 = sshll.u32 %s194_s1, 4  ;;  %s101_s4 = int_to_ptr.vmem [resolvable:$true] %s100_s4 }
  0x27   :  { %v40_v2 = vrot.slane %v39_v1, 4  ;;  %v66_v21 = vshrl.u32 %v65_v20, 7  ;;  %s164_s5 = scalar_lea.vmem %s101_s4, 128  ;;  %p169_p3 = scmp.lt.s32.totalorder %s101_s4, %s101_s4 }
  0x28   :  { %p165_p2 = scmp.ne.s32.totalorder %s101_s4, %s164_s5  ;;  %p170_p4 = scmp.lt.s32.totalorder %s164_s5, %s164_s5 }
  0x29   :  { %v41_v3 = vadd.f32 %v40_v2, %v39_v1  ;;  %v67_v23 = vsub.s32 0, %v66_v21  ;;  %v72_v29 = vsub.s32 1, %v66_v21  ;;  %v84_v38 = vsub.s32 2, %v66_v21 }
  0x2a   :  { %p171_p5 = por %p170_p4, %p169_p3 }
  0x2b   :  { %v42_v4 = vrot.slane %v41_v3, 2  ;;  %v85_v39 = vrot.slane %v81_v37, %v84_v38  ;;  %v90_v40 = vrot.slane %v37_v22, %v84_v38 }
  0x2c   :  { %p172_p6 = pnand %p171_p5, %p165_p2 }
  0x2d   :  { %v43_v5 = vadd.f32 %v42_v4, %v41_v3 }
  0x2f   :  { %v44_v6 = vrot.slane %v43_v5, 1 }
  0x31   :  { %v45_v7 = vadd.f32 %v44_v6, %v43_v5 }
  0x33   :  { %v46_v8 = vmul.f32 0.125, %v45_v7 }
  0x35   :  { %v47_v9 = vsub.f32 %v36_v0, %v46_v8 }
  0x37   :  { %v48_v10 = vmul.f32 %v47_v9, %v47_v9 }
  0x39   :  { %v49_v11 = vsel %vm38_vm0, %v48_v10, 0.0 }
  0x3a   :  { %v50_v12 = vrot.slane %v49_v11, 4 }
  0x3c   :  { %v51_v13 = vadd.f32 %v50_v12, %v49_v11 }
  0x3e   :  { %v52_v14 = vrot.slane %v51_v13, 2 }
  0x40   :  { %v53_v15 = vadd.f32 %v52_v14, %v51_v13 }
  0x42   :  { %v54_v16 = vrot.slane %v53_v15, 1 }
  0x44   :  { %v55_v17 = vadd.f32 %v54_v16, %v53_v15 }
  0x46   :  { %v56_v18 = vmul.f32 0.125, %v55_v17 }
  0x48   :  { %v57_v19 = vadd.f32 1e-08, %v56_v18 }
  0x4a   :  { %114 = vrsqrt.f32 %v57_v19 }
  0x54   :  { %v115_v24 = vpop.eup %114 }
  0x55   :  { %v59_v25 = vmul.f32 %v115_v24, %v37_v22 }
  0x57   :  { %v60_v26 = vmul.f32 %v59_v25, %v46_v8  ;;  %v68_v27 = vrot.slane %v59_v25, %v67_v23 }
  0x59   :  { %v62_v28 = vrot.slane %v60_v26, 7  ;;  %v69_v31 = vmul.f32 %v68_v27, %v36_v0 }
  0x5b   :  { %v64_v30 = vsub.f32 %v37_v22, %v62_v28 }
  0x5d   :  { %v73_v32 = vrot.slane %v64_v30, %v72_v29 }
  0x5f   :  { %v74_v33 = vadd.f32 %v73_v32, %v69_v31 }
  0x61   :  { %v110_v34 = vmul.f32 -1.442695, %v74_v33 }
  0x63   :  { %116 = vpow2.f32 %v110_v34 }
  0x6d   :  { %v117_v35 = vpop.eup %116 }
  0x6e   :  { %v78_v36 = vadd.f32 1.0, %v117_v35 }
  0x70   :  { %118 = vrcp.f32 %v78_v36 }
  0x7a   :  { %v119_v41 = vpop.eup %118 }
  0x7b   :  { %v86_v42 = vmul.f32 %v119_v41, %v85_v39 }
  0x7d   :  { %v91_v43 = vadd.f32 %v90_v40, %v86_v42 }
  0x7f   :  { %v92_v44 = vmul.f32 %v91_v43, %v36_v0 }
  0x81   :  { %93 = vst.msk [vmem:[#allocation7] sm:$0xff] %vm38_vm0, %v92_v44 }
  0x82   :  { %175 = shalt.err (!%p172_p6)
}
  0x83   :  { %s176_s8 = scalar_lea.hbm %s251_s2, 128 }
  0x84   :  { %p177_p7 = scmp.ne.s32.totalorder %s251_s2, %s176_s8  ;;  %p180_p8 = scmp.lt.u32.totalorder %s176_s8, %s251_s2 }
  0x86   :  { %p182_p9 = pnand %p180_p8, %p177_p7 }
  0x88   :  { %185 = shalt.err (!%p182_p9)
}
  0x89   :  { %103 = dma.vmem_to_hbm [thread:$0]  %s101_s4, 128, %s251_s2, [#allocation4]  }
  0x8a   :  { %190 = dma.done.wait [#allocation4], 128  }
  0x8b   :  { %191 = vsyncadd [#allocation4], 4294967168 }
  0x8c   :  { %107 = vsyncpa [#allocation3], 1 }
  0x8d   :  { %108 = vsyncpa [#allocation6], 1 }
  0x8e   :  { %109 = vsyncpa [#allocation4], 1 }

</bundles_post_ra>
